<compile_context>
chip_gen: v5e
topology: v5e:2x2
jax: 0.10.0
libtpu: 0.0.40
codegen_flags: <defaults>
</compile_context>

<pallas_src>
import jax
import jax.numpy as jnp
from jax.experimental import pallas as pl
from jax.experimental.pallas import tpu as pltpu


def _round_up(x, m):
    return ((x + m - 1) // m) * m


# -----------------------------------------------------------------------------
# Kernel: one GRU-agent step per grid iteration (grid = (T,)).
# -----------------------------------------------------------------------------
def pagent_kernel(obs_ref, h0_ref,
                  w1_ref, b1_ref,
                  wg_ref, bg_ref,
                  w2_ref, b2_ref,
                  q_ref, h_out_ref,
                  h_scr):
    """fc1 -> ReLU -> GRUCell -> fc2 -> clamp, weights VMEM-resident.

    Gate weights are packed in four HP-lane bands [r | z | n_in | n_hid],
    HP = round_up(H, 128), so every band slice is lane-tile aligned.
    Padded lanes of x / h are structurally zero and stay zero across steps.
    """
    t = pl.program_id(0)

    @pl.when(t == 0)
    def _init():
        h_scr[...] = h0_ref[...]

    h = h_scr[...]                                         # (B, HP) f32
    HP = h.shape[-1]

    # fc1 + ReLU  (bf16 MXU operands, f32 accumulate)
    x = jnp.dot(obs_ref[...].astype(jnp.bfloat16), w1_ref[...],
                preferred_element_type=jnp.float32)
    x = jnp.maximum(x + b1_ref[...], 0.0)                  # (B, HP)

    # Fused GRU gate matmul: single MXU push, K = 2*HP (tile-aligned concat).
    xh = jnp.concatenate([x, h], axis=1).astype(jnp.bfloat16)      # (B, 2*HP)
    g = jnp.dot(xh, wg_ref[...], preferred_element_type=jnp.float32) + bg_ref[...]

    # Band slices start at multiples of 128 lanes -> free, tile-aligned views.
    r = jax.nn.sigmoid(g[:, 0 * HP:1 * HP])                # reset gate
    z = jax.nn.sigmoid(g[:, 1 * HP:2 * HP])                # update gate
    n = jnp.tanh(g[:, 2 * HP:3 * HP] + r * g[:, 3 * HP:4 * HP])
    h_new = (1.0 - z) * n + z * h                          # padded lanes stay 0

    # fc2 (lane-dense 128-wide output slab) + clamp
    q = jnp.dot(h_new.astype(jnp.bfloat16), w2_ref[...],
                preferred_element_type=jnp.float32) + b2_ref[...]
    q_ref[...] = jnp.clip(q, -5.0, 2.0)

    h_scr[...] = h_new
    h_out_ref[...] = h_new


# -----------------------------------------------------------------------------
# One-time weight layout / quantization.
# -----------------------------------------------------------------------------
def prepare_params(params):
    """Transpose, fuse, lane-pad and bf16-cast the weights (done once).

    Raw params use PyTorch layout:
      w1 (H, IN), b1 (H,), w_ih/w_hh (3H, H) gate order [r, z, n],
      b_ih/b_hh (3H,), w2 (A, H), b2 (A,).
    """
    H = params["w_hh"].shape[1]
    IN = params["w1"].shape[1]
    A = params["w2"].shape[0]
    HP = _round_up(H, 128)       # padded hidden width == gate band width
    AP = _round_up(A, 128)       # padded action width (lane-dense store)

    f32 = jnp.float32
    w_ih = params["w_ih"].astype(f32)
    w_hh = params["w_hh"].astype(f32)
    b_ih = params["b_ih"].astype(f32)
    b_hh = params["b_hh"].astype(f32)

    # fc1: output columns padded to HP lanes (padded columns = 0 -> x pad = 0).
    w1p = jnp.zeros((IN, HP), f32).at[:, :H].set(params["w1"].astype(f32).T)
    b1p = jnp.zeros((1, HP), f32).at[0, :H].set(params["b1"].astype(f32))

    # Fused gate weight: rows 0:HP act on x, rows HP:2HP act on h.
    # Bands: [r | z | n_input | n_hidden], each HP lanes wide.
    wg = jnp.zeros((2 * HP, 4 * HP), f32)
    wg = wg.at[0:H, 0 * HP:0 * HP + H].set(w_ih[0:H].T)               # r, x
    wg = wg.at[HP:HP + H, 0 * HP:0 * HP + H].set(w_hh[0:H].T)         # r, h
    wg = wg.at[0:H, 1 * HP:1 * HP + H].set(w_ih[H:2 * H].T)           # z, x
    wg = wg.at[HP:HP + H, 1 * HP:1 * HP + H].set(w_hh[H:2 * H].T)     # z, h
    wg = wg.at[0:H, 2 * HP:2 * HP + H].set(w_ih[2 * H:3 * H].T)       # n, x
    wg = wg.at[HP:HP + H, 3 * HP:3 * HP + H].set(w_hh[2 * H:3 * H].T)  # n, h

    bg = jnp.zeros((1, 4 * HP), f32)
    bg = bg.at[0, 0 * HP:0 * HP + H].set(b_ih[0:H] + b_hh[0:H])         # r
    bg = bg.at[0, 1 * HP:1 * HP + H].set(b_ih[H:2 * H] + b_hh[H:2 * H])  # z
    bg = bg.at[0, 2 * HP:2 * HP + H].set(b_ih[2 * H:3 * H])             # n_in
    bg = bg.at[0, 3 * HP:3 * HP + H].set(b_hh[2 * H:3 * H])             # n_hid

    w2p = jnp.zeros((HP, AP), f32).at[:H, :A].set(params["w2"].astype(f32).T)
    b2p = jnp.zeros((1, AP), f32).at[0, :A].set(params["b2"].astype(f32))

    return {
        "w1": w1p.astype(jnp.bfloat16),   # MXU operands in bf16
        "b1": b1p,                        # biases stay f32
        "wg": wg.astype(jnp.bfloat16),
        "bg": bg,
        "w2": w2p.astype(jnp.bfloat16),
        "b2": b2p,
        "H": H, "HP": HP, "A": A, "AP": AP, "IN": IN,
    }


# -----------------------------------------------------------------------------
# pallas_call wrapper: in-kernel rollout over T steps.
# -----------------------------------------------------------------------------
def _pagent_call(obs_seq, h0_pad, kp):
    T, B, IN = obs_seq.shape
    HP, AP = kp["HP"], kp["AP"]

    cost = pl.CostEstimate(
        flops=int(2 * T * B * (IN * HP + (2 * HP) * (4 * HP) + HP * AP)),
        transcendentals=int(3 * T * B * HP),
        bytes_accessed=int(
            4 * (obs_seq.size + 2 * h0_pad.size + T * B * AP)
            + 2 * (kp["w1"].size + kp["wg"].size + kp["w2"].size)
            + 4 * (kp["b1"].size + kp["bg"].size + kp["b2"].size)),
    )

    grid_spec = pltpu.PrefetchScalarGridSpec(
        num_scalar_prefetch=0,
        grid=(T,),
        in_specs=[
            pl.BlockSpec((None, B, IN), lambda t: (t, 0, 0)),   # obs: per-step stream
            pl.BlockSpec((B, HP), lambda t: (0, 0)),            # h0: loaded once
            pl.BlockSpec((IN, HP), lambda t: (0, 0)),           # weights: VMEM-resident
            pl.BlockSpec((1, HP), lambda t: (0, 0)),
            pl.BlockSpec((2 * HP, 4 * HP), lambda t: (0, 0)),
            pl.BlockSpec((1, 4 * HP), lambda t: (0, 0)),
            pl.BlockSpec((HP, AP), lambda t: (0, 0)),
            pl.BlockSpec((1, AP), lambda t: (0, 0)),
        ],
        out_specs=(
            pl.BlockSpec((None, B, AP), lambda t: (t, 0, 0)),   # q: per-step stream
            pl.BlockSpec((B, HP), lambda t: (0, 0)),            # final hidden
        ),
        scratch_shapes=[pltpu.VMEM((B, HP), jnp.float32)],      # carried hidden state
    )

    q_pad, h_pad = pl.pallas_call(
        pagent_kernel,
        out_shape=(
            jax.ShapeDtypeStruct((T, B, AP), jnp.float32),
            jax.ShapeDtypeStruct((B, HP), jnp.float32),
        ),
        grid_spec=grid_spec,
        compiler_params=pltpu.CompilerParams(
            dimension_semantics=("arbitrary",)),                # h carried across steps
        # h0 (input 1) aliases the final hidden output (output 1): no extra HBM
        # hidden buffer when the caller donates the hidden state (rollout loops).
        input_output_aliases={1: 1},
        cost_estimate=cost,
    )(obs_seq, h0_pad, kp["w1"], kp["b1"], kp["wg"], kp["bg"], kp["w2"], kp["b2"])
    return q_pad, h_pad


def pagent_rollout(obs_seq, hidden_state, kp):
    """obs_seq (T, B, IN), hidden_state (..., H) -> (q_seq (T, B, A), h_T (B, H))."""
    T, B, _ = obs_seq.shape
    H, HP, A = kp["H"], kp["HP"], kp["A"]
    h_in = hidden_state.reshape(-1, H).astype(jnp.float32)
    h0_pad = jnp.zeros((B, HP), jnp.float32).at[:, :H].set(h_in)
    q_pad, h_pad = _pagent_call(obs_seq.astype(jnp.float32), h0_pad, kp)
    return q_pad[:, :, :A], h_pad[:, :H]


def pagent_forward(obs, hidden_state, kp):
    """Single step matching Pagent.forward: obs (B, IN) -> (q (B, A), h (B, H))."""
    q_seq, h = pagent_rollout(obs[None], hidden_state, kp)
    return q_seq[0], h


# -----------------------------------------------------------------------------
# Init + pure-JAX reference (PyTorch GRUCell semantics).
# -----------------------------------------------------------------------------
def init_params(key, input_shape, hidden_dim, n_actions):
    ks = jax.random.split(key, 8)

    def u(k, shape, fan_in):
        bound = 1.0 / jnp.sqrt(jnp.float32(fan_in))
        return jax.random.uniform(k, shape, jnp.float32, -bound, bound)

    return {
        "w1": u(ks[0], (hidden_dim, input_shape), input_shape),
        "b1": u(ks[1], (hidden_dim,), input_shape),
        "w_ih": u(ks[2], (3 * hidden_dim, hidden_dim), hidden_dim),
        "b_ih": u(ks[3], (3 * hidden_dim,), hidden_dim),
        "w_hh": u(ks[4], (3 * hidden_dim, hidden_dim), hidden_dim),
        "b_hh": u(ks[5], (3 * hidden_dim,), hidden_dim),
        "w2": u(ks[6], (n_actions, hidden_dim), hidden_dim),
        "b2": u(ks[7], (n_actions,), hidden_dim),
    }


def pagent_reference_step(obs, h, params):
    H = params["w_hh"].shape[1]
    x = jax.nn.relu(obs @ params["w1"].T + params["b1"])
    gi = x @ params["w_ih"].T + params["b_ih"]
    gh = h @ params["w_hh"].T + params["b_hh"]
    r = jax.nn.sigmoid(gi[:, :H] + gh[:, :H])
    z = jax.nn.sigmoid(gi[:, H:2 * H] + gh[:, H:2 * H])
    n = jnp.tanh(gi[:, 2 * H:] + r * gh[:, 2 * H:])
    h_new = (1.0 - z) * n + z * h
    q = jnp.clip(h_new @ params["w2"].T + params["b2"], -5.0, 2.0)
    return q, h_new


def pagent_reference_rollout(obs_seq, hidden_state, params):
    H = params["w_hh"].shape[1]
    h = hidden_state.reshape(-1, H)
    qs = []
    for t in range(obs_seq.shape[0]):
        q, h = pagent_reference_step(obs_seq[t], h, params)
        qs.append(q)
    return jnp.stack(qs, 0), h


if __name__ == "__main__":
    key = jax.random.PRNGKey(0)
    k_obs, k_h, k_p, k_seq = jax.random.split(key, 4)

    batch = 8
    input_shape = 48      # obs feature dim
    rnn_hidden_dim = 32
    n_actions = 8
    T = 6                 # rollout length for the in-kernel time loop

    obs = jax.random.normal(k_obs, (batch, input_shape), jnp.float32)
    hidden = jax.random.normal(k_h, (batch, rnn_hidden_dim), jnp.float32)
    obs_seq = jax.random.normal(k_seq, (T, batch, input_shape), jnp.float32)
    params = init_params(k_p, input_shape, rnn_hidden_dim, n_actions)

    # Reference uses the same bf16-quantized weights the kernel uses
    # (activations / accumulation stay f32 in both).
    params_q = {k: (v.astype(jnp.bfloat16).astype(jnp.float32)
                    if k in ("w1", "w_ih", "w_hh", "w2") else v)
                for k, v in params.items()}
    q_ref, h_ref = pagent_reference_step(
        obs, hidden.reshape(-1, rnn_hidden_dim), params_q)
    qs_ref, hT_ref = pagent_reference_rollout(obs_seq, hidden, params_q)

    # One-time layout/quantization prep, then the Pallas kernel.
    kparams = prepare_params(params)

    q, h = pagent_forward(obs, hidden, kparams)                 # single step
    q_seq, h_T = pagent_rollout(obs_seq, hidden, kparams)       # in-kernel rollout
    jax.block_until_ready((q, h, q_seq, h_T))

    assert q.shape == (batch, n_actions), f"bad q shape {q.shape}"
    assert h.shape == (batch, rnn_hidden_dim), f"bad h shape {h.shape}"
    assert q_seq.shape == (T, batch, n_actions), f"bad q_seq shape {q_seq.shape}"
    assert h_T.shape == (batch, rnn_hidden_dim), f"bad h_T shape {h_T.shape}"

    tol = dict(atol=3e-2, rtol=3e-2)  # bf16 weight/operand quantization
    assert jnp.allclose(q, q_ref, **tol), "single-step q mismatch vs reference"
    assert jnp.allclose(h, h_ref, **tol), "single-step h mismatch vs reference"
    assert jnp.allclose(q_seq, qs_ref, **tol), "rollout q mismatch vs reference"
    assert jnp.allclose(h_T, hT_ref, **tol), "rollout h mismatch vs reference"

    print("KERNEL_OK")
</pallas_src>

<mosaic_0001>
module attributes {stable_mosaic.version = 11 : i64} {
  func.func @pagent_kernel(%arg0: i32, %arg1: memref<1x8x48xf32, #tpu.memory_space<vmem>>, %arg2: memref<8x128xf32, #tpu.memory_space<vmem>>, %arg3: memref<48x128xbf16, #tpu.memory_space<vmem>>, %arg4: memref<1x128xf32, #tpu.memory_space<vmem>>, %arg5: memref<256x512xbf16, #tpu.memory_space<vmem>>, %arg6: memref<1x512xf32, #tpu.memory_space<vmem>>, %arg7: memref<128x128xbf16, #tpu.memory_space<vmem>>, %arg8: memref<1x128xf32, #tpu.memory_space<vmem>>, %arg9: memref<1x8x128xf32, #tpu.memory_space<vmem>>, %arg10: memref<8x128xf32, #tpu.memory_space<vmem>>, %arg11: memref<8x128xf32, #tpu.memory_space<vmem>>) attributes {dimension_semantics = [#tpu.dimension_semantics<arbitrary>], iteration_bounds = array<i64: 1>, scalar_prefetch = 0 : i64, scratch_operands = 1 : i64, tpu.core_type = #tpu.core_type<tc>, window_params = [{transform_indices = @transform_0, window_bounds = array<i64: 1, 8, 48>}, {pipeline_mode = #tpu.pipeline_mode<synchronous>, transform_indices = @transform_1, window_bounds = array<i64: 8, 128>}, {pipeline_mode = #tpu.pipeline_mode<synchronous>, transform_indices = @transform_2, window_bounds = array<i64: 48, 128>}, {pipeline_mode = #tpu.pipeline_mode<synchronous>, transform_indices = @transform_3, window_bounds = array<i64: 1, 128>}, {pipeline_mode = #tpu.pipeline_mode<synchronous>, transform_indices = @transform_4, window_bounds = array<i64: 256, 512>}, {pipeline_mode = #tpu.pipeline_mode<synchronous>, transform_indices = @transform_5, window_bounds = array<i64: 1, 512>}, {pipeline_mode = #tpu.pipeline_mode<synchronous>, transform_indices = @transform_6, window_bounds = array<i64: 128, 128>}, {pipeline_mode = #tpu.pipeline_mode<synchronous>, transform_indices = @transform_7, window_bounds = array<i64: 1, 128>}, {transform_indices = @transform_8, window_bounds = array<i64: 1, 8, 128>}, {pipeline_mode = #tpu.pipeline_mode<synchronous>, transform_indices = @transform_9, window_bounds = array<i64: 8, 128>}]} {
    %c0_i32 = arith.constant 0 : i32
    %0 = arith.cmpi eq, %arg0, %c0_i32 : i32
    %1 = arith.extui %0 : i1 to i32
    %c0_i32_0 = arith.constant 0 : i32
    %2 = arith.cmpi ne, %1, %c0_i32_0 : i32
    scf.if %2 {
      %c0_32 = arith.constant 0 : index
      %c0_33 = arith.constant 0 : index
      %58 = vector.load %arg2[%c0_32, %c0_33] : memref<8x128xf32, #tpu.memory_space<vmem>>, vector<8x128xf32>
      %c0_34 = arith.constant 0 : index
      %c0_35 = arith.constant 0 : index
      %59 = vector.load %arg11[%c0_34, %c0_35] : memref<8x128xf32, #tpu.memory_space<vmem>>, vector<8x128xf32>
      tpu.vector_store %arg11[%c0_34, %c0_35], %58 {strides = array<i32>} : memref<8x128xf32, #tpu.memory_space<vmem>>, vector<8x128xf32>,
    } else {
    }
    %c0 = arith.constant 0 : index
    %c0_1 = arith.constant 0 : index
    %3 = vector.load %arg11[%c0, %c0_1] : memref<8x128xf32, #tpu.memory_space<vmem>>, vector<8x128xf32>
    %c0_2 = arith.constant 0 : index
    %c0_3 = arith.constant 0 : index
    %c0_4 = arith.constant 0 : index
    %4 = vector.load %arg1[%c0_2, %c0_3, %c0_4] : memref<1x8x48xf32, #tpu.memory_space<vmem>>, vector<1x8x48xf32>
    %5 = vector.shape_cast %4 : vector<1x8x48xf32> to vector<8x48xf32>
    %6 = arith.truncf %5 : vector<8x48xf32> to vector<8x48xbf16>
    %c0_5 = arith.constant 0 : index
    %c0_6 = arith.constant 0 : index
    %7 = vector.load %arg3[%c0_5, %c0_6] : memref<48x128xbf16, #tpu.memory_space<vmem>>, vector<48x128xbf16>
    %cst = arith.constant dense<0.000000e+00> : vector<8x128xf32>
    %8 = tpu.matmul %6, %7, %cst {dimension_numbers = #tpu.dot_dimension_numbers<[1], [0], [0], [1], [0, 0, 1, 1], [], []>} : vector<8x48xbf16>, vector<48x128xbf16>, vector<8x128xf32> -> vector<8x128xf32>
    %c0_7 = arith.constant 0 : index
    %c0_8 = arith.constant 0 : index
    %9 = vector.load %arg4[%c0_7, %c0_8] : memref<1x128xf32, #tpu.memory_space<vmem>>, vector<1x128xf32>
    %10 = vector.broadcast %9 : vector<1x128xf32> to vector<8x128xf32>
    %11 = arith.addf %8, %10 : vector<8x128xf32>
    %cst_9 = arith.constant 0.000000e+00 : f32
    %12 = vector.broadcast %cst_9 : f32 to vector<8x128xf32>
    %13 = arith.maximumf %11, %12 : vector<8x128xf32>
    %14 = tpu.concatenate %13, %3 in 1 : vector<8x128xf32>, vector<8x128xf32> -> vector<8x256xf32>
    %15 = arith.truncf %14 : vector<8x256xf32> to vector<8x256xbf16>
    %c0_10 = arith.constant 0 : index
    %c0_11 = arith.constant 0 : index
    %16 = vector.load %arg5[%c0_10, %c0_11] : memref<256x512xbf16, #tpu.memory_space<vmem>>, vector<256x512xbf16>
    %cst_12 = arith.constant dense<0.000000e+00> : vector<8x512xf32>
    %17 = tpu.matmul %15, %16, %cst_12 {dimension_numbers = #tpu.dot_dimension_numbers<[1], [0], [0], [1], [0, 0, 1, 1], [], []>} : vector<8x256xbf16>, vector<256x512xbf16>, vector<8x512xf32> -> vector<8x512xf32>
    %c0_13 = arith.constant 0 : index
    %c0_14 = arith.constant 0 : index
    %18 = vector.load %arg6[%c0_13, %c0_14] : memref<1x512xf32, #tpu.memory_space<vmem>>, vector<1x512xf32>
    %19 = vector.broadcast %18 : vector<1x512xf32> to vector<8x512xf32>
    %20 = arith.addf %17, %19 : vector<8x512xf32>
    %21 = vector.extract_strided_slice %20 {offsets = [0, 0], sizes = [8, 128], strides = [1, 1]} : vector<8x512xf32> to vector<8x128xf32>
    %22 = arith.negf %21 : vector<8x128xf32>
    %23 = math.exp %22 : vector<8x128xf32>
    %cst_15 = arith.constant 1.000000e+00 : f32
    %24 = vector.broadcast %cst_15 : f32 to vector<8x128xf32>
    %25 = arith.addf %24, %23 : vector<8x128xf32>
    %26 = arith.divf %24, %25 : vector<8x128xf32>
    %27 = vector.extract_strided_slice %20 {offsets = [0, 128], sizes = [8, 128], strides = [1, 1]} : vector<8x512xf32> to vector<8x128xf32>
    %28 = arith.negf %27 : vector<8x128xf32>
    %29 = math.exp %28 : vector<8x128xf32>
    %cst_16 = arith.constant 1.000000e+00 : f32
    %30 = vector.broadcast %cst_16 : f32 to vector<8x128xf32>
    %31 = arith.addf %30, %29 : vector<8x128xf32>
    %32 = arith.divf %30, %31 : vector<8x128xf32>
    %33 = vector.extract_strided_slice %20 {offsets = [0, 256], sizes = [8, 128], strides = [1, 1]} : vector<8x512xf32> to vector<8x128xf32>
    %34 = vector.extract_strided_slice %20 {offsets = [0, 384], sizes = [8, 128], strides = [1, 1]} : vector<8x512xf32> to vector<8x128xf32>
    %35 = arith.mulf %26, %34 : vector<8x128xf32>
    %36 = arith.addf %33, %35 : vector<8x128xf32>
    %37 = math.tanh %36 : vector<8x128xf32>
    %cst_17 = arith.constant 1.000000e+00 : f32
    %38 = vector.broadcast %cst_17 : f32 to vector<8x128xf32>
    %39 = arith.subf %38, %32 : vector<8x128xf32>
    %40 = arith.mulf %39, %37 : vector<8x128xf32>
    %41 = arith.mulf %32, %3 : vector<8x128xf32>
    %42 = arith.addf %40, %41 : vector<8x128xf32>
    %43 = arith.truncf %42 : vector<8x128xf32> to vector<8x128xbf16>
    %c0_18 = arith.constant 0 : index
    %c0_19 = arith.constant 0 : index
    %44 = vector.load %arg7[%c0_18, %c0_19] : memref<128x128xbf16, #tpu.memory_space<vmem>>, vector<128x128xbf16>
    %cst_20 = arith.constant dense<0.000000e+00> : vector<8x128xf32>
    %45 = tpu.matmul %43, %44, %cst_20 {dimension_numbers = #tpu.dot_dimension_numbers<[1], [0], [0], [1], [0, 0, 1, 1], [], []>} : vector<8x128xbf16>, vector<128x128xbf16>, vector<8x128xf32> -> vector<8x128xf32>
    %c0_21 = arith.constant 0 : index
    %c0_22 = arith.constant 0 : index
    %46 = vector.load %arg8[%c0_21, %c0_22] : memref<1x128xf32, #tpu.memory_space<vmem>>, vector<1x128xf32>
    %47 = vector.broadcast %46 : vector<1x128xf32> to vector<8x128xf32>
    %48 = arith.addf %45, %47 : vector<8x128xf32>
    %cst_23 = arith.constant -5.000000e+00 : f32
    %cst_24 = arith.constant 2.000000e+00 : f32
    %49 = vector.broadcast %cst_23 : f32 to vector<8x128xf32>
    %50 = arith.maximumf %49, %48 : vector<8x128xf32>
    %51 = vector.broadcast %cst_24 : f32 to vector<8x128xf32>
    %52 = arith.minimumf %51, %50 : vector<8x128xf32>
    %c0_25 = arith.constant 0 : index
    %c0_26 = arith.constant 0 : index
    %c0_27 = arith.constant 0 : index
    %53 = vector.load %arg9[%c0_25, %c0_26, %c0_27] : memref<1x8x128xf32, #tpu.memory_space<vmem>>, vector<1x8x128xf32>
    %54 = vector.shape_cast %53 : vector<1x8x128xf32> to vector<8x128xf32>
    %55 = vector.shape_cast %52 : vector<8x128xf32> to vector<1x8x128xf32>
    tpu.vector_store %arg9[%c0_25, %c0_26, %c0_27], %55 {strides = array<i32>} : memref<1x8x128xf32, #tpu.memory_space<vmem>>, vector<1x8x128xf32>,
    %c0_28 = arith.constant 0 : index
    %c0_29 = arith.constant 0 : index
    %56 = vector.load %arg11[%c0_28, %c0_29] : memref<8x128xf32, #tpu.memory_space<vmem>>, vector<8x128xf32>
    tpu.vector_store %arg11[%c0_28, %c0_29], %42 {strides = array<i32>} : memref<8x128xf32, #tpu.memory_space<vmem>>, vector<8x128xf32>,
    %c0_30 = arith.constant 0 : index
    %c0_31 = arith.constant 0 : index
    %57 = vector.load %arg10[%c0_30, %c0_31] : memref<8x128xf32, #tpu.memory_space<vmem>>, vector<8x128xf32>
    tpu.vector_store %arg10[%c0_30, %c0_31], %42 {strides = array<i32>} : memref<8x128xf32, #tpu.memory_space<vmem>>, vector<8x128xf32>,
    return
  }
  func.func @transform_0(%arg0: i32) -> (i32, i32, i32) {
    %c0_i32 = arith.constant 0 : i32
    %c0_i32_0 = arith.constant 0 : i32
    %c0_i32_1 = arith.constant 0 : i32
    return %arg0, %c0_i32, %c0_i32_0 : i32, i32, i32
  }
  func.func @transform_1(%arg0: i32) -> (i32, i32) {
    %c0_i32 = arith.constant 0 : i32
    %c0_i32_0 = arith.constant 0 : i32
    %c0_i32_1 = arith.constant 0 : i32
    return %c0_i32, %c0_i32_0 : i32, i32
  }
  func.func @transform_2(%arg0: i32) -> (i32, i32) {
    %c0_i32 = arith.constant 0 : i32
    %c0_i32_0 = arith.constant 0 : i32
    %c0_i32_1 = arith.constant 0 : i32
    return %c0_i32, %c0_i32_0 : i32, i32
  }
  func.func @transform_3(%arg0: i32) -> (i32, i32) {
    %c0_i32 = arith.constant 0 : i32
    %c0_i32_0 = arith.constant 0 : i32
    %c0_i32_1 = arith.constant 0 : i32
    return %c0_i32, %c0_i32_0 : i32, i32
  }
  func.func @transform_4(%arg0: i32) -> (i32, i32) {
    %c0_i32 = arith.constant 0 : i32
    %c0_i32_0 = arith.constant 0 : i32
    %c0_i32_1 = arith.constant 0 : i32
    return %c0_i32, %c0_i32_0 : i32, i32
  }
  func.func @transform_5(%arg0: i32) -> (i32, i32) {
    %c0_i32 = arith.constant 0 : i32
    %c0_i32_0 = arith.constant 0 : i32
    %c0_i32_1 = arith.constant 0 : i32
    return %c0_i32, %c0_i32_0 : i32, i32
  }
  func.func @transform_6(%arg0: i32) -> (i32, i32) {
    %c0_i32 = arith.constant 0 : i32
    %c0_i32_0 = arith.constant 0 : i32
    %c0_i32_1 = arith.constant 0 : i32
    return %c0_i32, %c0_i32_0 : i32, i32
  }
  func.func @transform_7(%arg0: i32) -> (i32, i32) {
    %c0_i32 = arith.constant 0 : i32
    %c0_i32_0 = arith.constant 0 : i32
    %c0_i32_1 = arith.constant 0 : i32
    return %c0_i32, %c0_i32_0 : i32, i32
  }
  func.func @transform_8(%arg0: i32) -> (i32, i32, i32) {
    %c0_i32 = arith.constant 0 : i32
    %c0_i32_0 = arith.constant 0 : i32
    %c0_i32_1 = arith.constant 0 : i32
    return %arg0, %c0_i32, %c0_i32_0 : i32, i32, i32
  }
  func.func @transform_9(%arg0: i32) -> (i32, i32) {
    %c0_i32 = arith.constant 0 : i32
    %c0_i32_0 = arith.constant 0 : i32
    %c0_i32_1 = arith.constant 0 : i32
    return %c0_i32, %c0_i32_0 : i32, i32
  }
}

</mosaic_0001>

<bundles_post_ra>
// kernel: tpu_custom_call.1
= control target key start
LH: loop header
LB: loop body
LE: loop exit
PB: predicated region body
PF: predicated region fallthrough
CT: control target
= control target key end

     0   :  { %15 = vsyncpa [#allocation4], 0  ;;  %s1475_s0 = inlined_call_operand.vmem [shape: f32[1,8,48], index: 0, kind: input, shape index: {}]   ;;  %s1476_s1 = inlined_call_operand.hbm [shape: f32[8,128], index: 1, kind: input, shape index: {}, may-alias: {1,9}]   ;;  %s1477_s2 = inlined_call_operand.hbm [shape: bf16[48,128], index: 2, kind: input, shape index: {}]   ;;  %s1478_s3 = inlined_call_operand.vmem [shape: f32[1,128], index: 3, kind: input, shape index: {}]   ;;  %s1479_s4 = inlined_call_operand.hbm [shape: bf16[256,512], index: 4, kind: input, shape index: {}]   ;;  %s1480_s5 = inlined_call_operand.vmem [shape: f32[1,512], index: 5, kind: input, shape index: {}]   ;;  %s1481_s6 = inlined_call_operand.hbm [shape: bf16[128,128], index: 6, kind: input, shape index: {}]   ;;  %s1482_s7 = inlined_call_operand.vmem [shape: f32[1,128], index: 7, kind: input, shape index: {}]   ;;  %s1483_s8 = inlined_call_operand.hbm [shape: f32[1,8,128], index: 8, kind: output, shape index: {0}]   ;;  %s1484_s9 = inlined_call_operand.hbm [shape: f32[8,128], index: 9, kind: output, shape index: {1}, may-alias: {1,9}]  }
   0x1   :  { %16 = vsyncpa [#allocation7], 0 }
   0x2   :  { %17 = vsyncpa [#allocation10], 0 }
   0x3   :  { %18 = vsyncpa [#allocation5], 0  ;;  %s37_s11 = sshll.u32 %s1477_s2, 4  ;;  %s38_s11 = int_to_ptr.hbm [resolvable:$true] %s37_s11 }
   0x4   :  { %19 = vsyncpa [#allocation13], 0  ;;  %s1371_s12 = smov [#allocation6]   ;;  %s27_s16 = sshll.u32 %s1476_s1, 4  ;;  %s28_s16 = int_to_ptr.hbm [resolvable:$true] %s27_s16 }
   0x5   :  { %s39_s13 = sshll.u32 %s1371_s12, 4  ;;  %s1372_s17 = smov 64   ;;  %s40_s13 = int_to_ptr.vmem [resolvable:$true] %s39_s13 }
   0x6   :  { %s1373_s18 = smov 4   ;;  %s1374_s19 = smov [#allocation3]  }
   0x7   :  { %45 = dma.hbm_to_vmem [thread:$0]  %s38_s11, 384, %s40_s13, [#allocation7], %s1372_s17, %s1372_s17, %s1373_s18  }
   0x8   :  { %s29_s20 = sshll.u32 %s1374_s19, 4  ;;  %s52_s23 = sshll.u32 %s1479_s4, 4  ;;  %s30_s20 = int_to_ptr.vmem [resolvable:$true] %s29_s20  ;;  %s53_s23 = int_to_ptr.hbm [resolvable:$true] %s52_s23 }
   0x9   :  { %32 = dma.hbm_to_vmem [thread:$0]  %s28_s16, 128, %s30_s20, [#allocation4]  }
   0xa   :  { %s1375_s2 = smov [#allocation8]   ;;  %s67_s1 = sshll.u32 %s1481_s6, 4  ;;  %s68_s1 = int_to_ptr.hbm [resolvable:$true] %s67_s1 }
   0xb   :  { %s54_s24 = sshll.u32 %s1375_s2, 4  ;;  %s1376_s27 = smov 256   ;;  %s55_s24 = int_to_ptr.vmem [resolvable:$true] %s54_s24 }
   0xc   :  { %s1377_s28 = smov 16   ;;  %s1378_s29 = smov [#allocation9]  }
   0xd   :  { %60 = dma.hbm_to_vmem [thread:$0]  %s53_s23, 8192, %s55_s24, [#allocation7], %s1376_s27, %s1376_s27, %s1377_s28  }
   0xe   :  { %s69_s30 = sshll.u32 %s1378_s29, 4  ;;  %s70_s30 = int_to_ptr.vmem [resolvable:$true] %s69_s30 }
   0xf   :  { %75 = dma.hbm_to_vmem [thread:$0]  %s68_s1, 1024, %s70_s30, [#allocation10], %s1372_s17, %s1372_s17, %s1373_s18  }
  0x10   :  { %1361 = dma.done.wait [#allocation4], 128  }
  0x11   :  { %1362 = vsyncadd [#allocation4], 4294967168 }
  0x12   :  { %1363 = dma.done.wait [#allocation7], 8576  }
  0x13   :  { %1364 = vsyncadd [#allocation7], 4294958720 }
  0x14   :  { %1365 = dma.done.wait [#allocation10], 1024  }
  0x15   :  { %1366 = vsyncadd [#allocation10], 4294966272  ;;  %v1122_v0 = vld [vmem:[#allocation6 + $0x10] sm:$0xff]  ;;  %v1121_v1 = vld [vmem:[#allocation6 + $0x8] sm:$0xff]  ;;  %vm132_vm0 = vcmask 392192   ;;  %s800_s15 = sshll.u32 %s1484_s9, 4  ;;  %s801_s15 = int_to_ptr.hbm [resolvable:$true] %s800_s15 }
  0x16   :  { %v1072_v2 = vld [vmem:[#allocation8 + $0x1e0] sm:$0xf]  ;;  %v1185_v3 = vld [vmem:[#allocation8 + $0x1ec] sm:$0xf0]  ;;  %141 = vmatpush.bf16.msra.mxu0 %v1122_v0  ;;  %v1151_v10 = vld [vmem:[#allocation8 + $0xe4] sm:$0xf] }
  0x17   :  { %v1073_v4 = vor.u32 %v1185_v3, %v1072_v2  ;;  %v944_v5 = vld [vmem:[#allocation8 + $0xe0] sm:$0xf]  ;;  %v1153_v6 = vld [vmem:[#allocation8 + $0xec] sm:$0xf0]  ;;  %v946_v11 = vld [vmem:[#allocation8 + $0xf0] sm:$0xf0] }
  0x18   :  { %v1056_v7 = vld [vmem:[#allocation8 + $0x1c0] sm:$0xf]  ;;  %v945_v8 = vor.u32 %v1153_v6, %v944_v5  ;;  %v1181_v9 = vld [vmem:[#allocation8 + $0x1cc] sm:$0xf0]  ;;  %v1120_v12 = vld [vmem:[#allocation6] sm:$0xff]  ;;  %v949_v15 = vor.u32 %v1151_v10, %v946_v11  ;;  %s1380_s18 = smov [#allocation11]  }
  0x19   :  { %v102_v13 = vld [vmem:[%s1475_s0] sm:$0xff]  ;;  %559 = vmatpush.bf16.msra.mxu2 %v1073_v4  ;;  %v1057_v14 = vor.u32 %v1181_v9, %v1056_v7  ;;  %v1149_v17 = vld [vmem:[#allocation8 + $0xcc] sm:$0xf0]  ;;  %v930_v22 = vld [vmem:[#allocation8 + $0xd0] sm:$0xf0]  ;;  %s787_s19 = sshll.u32 %s1380_s18, 4  ;;  %s788_s19 = int_to_ptr.vmem [resolvable:$true] %s787_s19 }
  0x1a   :  { %v928_v16 = vld [vmem:[#allocation8 + $0xc0] sm:$0xf]  ;;  %546 = vmatpush.bf16.msra.mxu1 %v945_v8  ;;  %v1177_v20 = vld [vmem:[#allocation8 + $0x1ac] sm:$0xf0]  ;;  %v1147_v21 = vld [vmem:[#allocation8 + $0xc4] sm:$0xf]  ;;  %142 = vmatpush.bf16.msra.mxu0 %v1121_v1  ;;  %v103_v33 = vpack.c.bf16 %v102_v13, %v102_v13 }
  0x1b   :  { %v1040_v18 = vld [vmem:[#allocation8 + $0x1a0] sm:$0xf]  ;;  %v929_v19 = vor.u32 %v1149_v17, %v928_v16  ;;  %572 = vmatpush.bf16.msra.mxu3 %v949_v15  ;;  %v933_v23 = vor.u32 %v1147_v21, %v930_v22  ;;  %v1183_v24 = vld [vmem:[#allocation8 + $0x1e4] sm:$0xf]  ;;  %v1074_v25 = vld [vmem:[#allocation8 + $0x1f0] sm:$0xf0] }
  0x1c   :  { %v912_v26 = vld [vmem:[#allocation8 + $0xa0] sm:$0xf]  ;;  %v1077_v27 = vor.u32 %v1183_v24, %v1074_v25  ;;  %v1145_v28 = vld [vmem:[#allocation8 + $0xac] sm:$0xf0]  ;;  %v1041_v29 = vor.u32 %v1177_v20, %v1040_v18  ;;  %v1143_v30 = vld [vmem:[#allocation8 + $0xa4] sm:$0xf] }
  0x1d   :  { %560 = vmatpush.bf16.msra.mxu2 %v1057_v14  ;;  %v914_v31 = vld [vmem:[#allocation8 + $0xb0] sm:$0xf0]  ;;  %v1179_v32 = vld [vmem:[#allocation8 + $0x1c4] sm:$0xf]  ;;  %v913_v34 = vor.u32 %v1145_v28, %v912_v26  ;;  %v1024_v35 = vld [vmem:[#allocation8 + $0x180] sm:$0xf] }
  0x1e   :  { %547 = vmatpush.bf16.msra.mxu1 %v929_v19  ;;  %v1173_v36 = vld [vmem:[#allocation8 + $0x18c] sm:$0xf0]  ;;  %v1058_v37 = vld [vmem:[#allocation8 + $0x1d0] sm:$0xf0]  ;;  %143 = vmatpush.bf16.msra.mxu0 %v1120_v12  ;;  %v917_v38 = vor.u32 %v1143_v30, %v914_v31  ;;  %v896_v39 = vld [vmem:[#allocation8 + $0x80] sm:$0xf] }
  0x1f   :  { %573 = vmatpush.bf16.msra.mxu3 %v933_v23  ;;  %v1141_v40 = vld [vmem:[#allocation8 + $0x8c] sm:$0xf0]  ;;  %v1061_v41 = vor.u32 %v1179_v32, %v1058_v37  ;;  %v1139_v42 = vld [vmem:[#allocation8 + $0x84] sm:$0xf]  ;;  %v898_v43 = vld [vmem:[#allocation8 + $0x90] sm:$0xf0]  ;;  %v1025_v44 = vor.u32 %v1173_v36, %v1024_v35 }
  0x20   :  { %v1175_v45 = vld [vmem:[#allocation8 + $0x1a4] sm:$0xf]  ;;  %v1042_v46 = vld [vmem:[#allocation8 + $0x1b0] sm:$0xf0]  ;;  %v897_v47 = vor.u32 %v1141_v40, %v896_v39  ;;  %v1008_v48 = vld [vmem:[#allocation8 + $0x160] sm:$0xf]  ;;  %v901_v50 = vor.u32 %v1139_v42, %v898_v43 }
  0x21   :  { %561 = vmatpush.bf16.msra.mxu2 %v1041_v29  ;;  %829 = vmatmul.msk.bf16.vlgmr.msra.gmra.mxu0 %vm132_vm0, %v103_v33  ;;  %v1169_v49 = vld [vmem:[#allocation8 + $0x16c] sm:$0xf0]  ;;  %v880_v51 = vld [vmem:[#allocation8 + $0x60] sm:$0xf]  ;;  %v1045_v53 = vor.u32 %v1175_v45, %v1042_v46  ;;  %v1135_v54 = vld [vmem:[#allocation8 + $0x64] sm:$0xf] }
  0x22   :  { %585 = vmatpush.bf16.msrb.mxu0 %v1077_v27  ;;  %548 = vmatpush.bf16.msra.mxu1 %v913_v34  ;;  %v1137_v52 = vld [vmem:[#allocation8 + $0x6c] sm:$0xf0]  ;;  %v882_v55 = vld [vmem:[#allocation8 + $0x70] sm:$0xf0]  ;;  %v1009_v56 = vor.u32 %v1169_v49, %v1008_v48  ;;  %v1171_v57 = vld [vmem:[#allocation8 + $0x184] sm:$0xf] }
  0x23   :  { %574 = vmatpush.bf16.msra.mxu3 %v917_v38  ;;  %v1026_v58 = vld [vmem:[#allocation8 + $0x190] sm:$0xf0]  ;;  %v881_v59 = vor.u32 %v1137_v52, %v880_v51  ;;  %v992_v60 = vld [vmem:[#allocation8 + $0x140] sm:$0xf]  ;;  %v1165_v61 = vld [vmem:[#allocation8 + $0x14c] sm:$0xf0]  ;;  %v885_v62 = vor.u32 %v1135_v54, %v882_v55 }
  0x24   :  { %v864_v63 = vld [vmem:[#allocation8 + $0x40] sm:$0xf]  ;;  %v1133_v0 = vld [vmem:[#allocation8 + $0x4c] sm:$0xf0]  ;;  %v1029_v1 = vor.u32 %v1171_v57, %v1026_v58  ;;  %v1131_v2 = vld [vmem:[#allocation8 + $0x44] sm:$0xf]  ;;  %v993_v4 = vor.u32 %v1165_v61, %v992_v60 }
  0x25   :  { %562 = vmatpush.bf16.msra.mxu2 %v1025_v44  ;;  %v866_v3 = vld [vmem:[#allocation8 + $0x50] sm:$0xf0]  ;;  %v1167_v5 = vld [vmem:[#allocation8 + $0x164] sm:$0xf]  ;;  %v865_v7 = vor.u32 %v1133_v0, %v864_v63  ;;  %v976_v8 = vld [vmem:[#allocation8 + $0x120] sm:$0xf] }
  0x26   :  { %586 = vmatpush.bf16.msrb.mxu0 %v1061_v41  ;;  %549 = vmatpush.bf16.msra.mxu1 %v897_v47  ;;  %v1010_v6 = vld [vmem:[#allocation8 + $0x170] sm:$0xf0]  ;;  %v1161_v9 = vld [vmem:[#allocation8 + $0x12c] sm:$0xf0]  ;;  %v869_v10 = vor.u32 %v1131_v2, %v866_v3  ;;  %v848_v11 = vld [vmem:[#allocation8 + $0x20] sm:$0xf] }
  0x27   :  { %575 = vmatpush.bf16.msra.mxu3 %v901_v50  ;;  %v1129_v12 = vld [vmem:[#allocation8 + $0x2c] sm:$0xf0]  ;;  %v1013_v13 = vor.u32 %v1167_v5, %v1010_v6  ;;  %v960_v14 = vld [vmem:[#allocation8 + $0x100] sm:$0xf]  ;;  %v1127_v16 = vld [vmem:[#allocation8 + $0x24] sm:$0xf]  ;;  %v977_v18 = vor.u32 %v1161_v9, %v976_v8 }
  0x28   :  { %v1157_v15 = vld [vmem:[#allocation8 + $0x10c] sm:$0xf0]  ;;  %v850_v17 = vld [vmem:[#allocation8 + $0x30] sm:$0xf0]  ;;  %v1080_v19 = vld [vmem:[#allocation8 + $0x1e8] sm:$0xf]  ;;  %v849_v22 = vor.u32 %v1129_v12, %v848_v11 }
  0x29   :  { %563 = vmatpush.bf16.msra.mxu2 %v1009_v56  ;;  %v1163_v20 = vld [vmem:[#allocation8 + $0x144] sm:$0xf]  ;;  %v994_v21 = vld [vmem:[#allocation8 + $0x150] sm:$0xf0]  ;;  %v1186_v23 = vld [vmem:[#allocation8 + $0x1f4] sm:$0xf0]  ;;  %v853_v26 = vor.u32 %v1127_v16, %v850_v17  ;;  %v961_v34 = vor.u32 %v1157_v15, %v960_v14 }
  0x2a   :  { %587 = vmatpush.bf16.msrb.mxu0 %v1045_v53  ;;  %550 = vmatpush.bf16.msra.mxu1 %v881_v59  ;;  %v832_v24 = vld [vmem:[#allocation8] sm:$0xf]  ;;  %v1125_v25 = vld [vmem:[#allocation8 + $0xc] sm:$0xf0]  ;;  %v1123_v27 = vld [vmem:[#allocation8 + $0x4] sm:$0xf]  ;;  %v997_v30 = vor.u32 %v1163_v20, %v994_v21  ;;  %v1081_v37 = vor.u32 %v1186_v23, %v1080_v19 }
  0x2b   :  { %576 = vmatpush.bf16.msra.mxu3 %v885_v62  ;;  %v834_v28 = vld [vmem:[#allocation8 + $0x10] sm:$0xf0]  ;;  %v952_v29 = vld [vmem:[#allocation8 + $0xe8] sm:$0xf]  ;;  %v1154_v31 = vld [vmem:[#allocation8 + $0xf4] sm:$0xf0]  ;;  %v833_v38 = vor.u32 %v1125_v25, %v832_v24 }
  0x2c   :  { %v1152_v32 = vld [vmem:[#allocation8 + $0xec] sm:$0xf]  ;;  %v954_v33 = vld [vmem:[#allocation8 + $0xf8] sm:$0xf0]  ;;  %v1159_v35 = vld [vmem:[#allocation8 + $0x124] sm:$0xf]  ;;  %v837_v40 = vor.u32 %v1123_v27, %v834_v28  ;;  %v953_v41 = vor.u32 %v1154_v31, %v952_v29 }
  0x2d   :  { %564 = vmatpush.bf16.msra.mxu2 %v993_v4  ;;  %v978_v36 = vld [vmem:[#allocation8 + $0x130] sm:$0xf0]  ;;  %v1446_v39 = vld [vmem:[#allocation3] sm:$0xff]  ;;  %v1064_v42 = vld [vmem:[#allocation8 + $0x1c8] sm:$0xf]  ;;  %v957_v44 = vor.u32 %v1152_v32, %v954_v33  ;;  %s789_s22 = sshll.u32 %s1483_s8, 4  ;;  %s790_s22 = int_to_ptr.hbm [resolvable:$true] %s789_s22 }
  0x2e   :  { %588 = vmatpush.bf16.msrb.mxu0 %v1029_v1  ;;  %551 = vmatpush.bf16.msra.mxu1 %v865_v7  ;;  %v1182_v43 = vld [vmem:[#allocation8 + $0x1d4] sm:$0xf0]  ;;  %v981_v45 = vor.u32 %v1159_v35, %v978_v36  ;;  %v936_v46 = vld [vmem:[#allocation8 + $0xc8] sm:$0xf]  ;;  %v1148_v48 = vld [vmem:[#allocation8 + $0xcc] sm:$0xf]  ;;  %v1450_v49 = vpack.c.bf16 %v1446_v39, %v1446_v39 }
  0x2f   :  { %577 = vmatpush.bf16.msra.mxu3 %v869_v10  ;;  %v1150_v47 = vld [vmem:[#allocation8 + $0xd4] sm:$0xf0]  ;;  %v938_v50 = vld [vmem:[#allocation8 + $0xd8] sm:$0xf0]  ;;  %v1155_v51 = vld [vmem:[#allocation8 + $0x104] sm:$0xf]  ;;  %v1065_v53 = vor.u32 %v1182_v43, %v1064_v42 }
  0x30   :  { %v962_v52 = vld [vmem:[#allocation8 + $0x110] sm:$0xf0]  ;;  %v1184_v54 = vld [vmem:[#allocation8 + $0x1ec] sm:$0xf]  ;;  %v1082_v55 = vld [vmem:[#allocation8 + $0x1f8] sm:$0xf0]  ;;  %v937_v56 = vor.u32 %v1150_v47, %v936_v46  ;;  %v941_v59 = vor.u32 %v1148_v48, %v938_v50 }
  0x31   :  { %565 = vmatpush.bf16.msra.mxu2 %v977_v18  ;;  %v1048_v57 = vld [vmem:[#allocation8 + $0x1a8] sm:$0xf]  ;;  %v1178_v58 = vld [vmem:[#allocation8 + $0x1b4] sm:$0xf0]  ;;  %v965_v60 = vor.u32 %v1155_v51, %v962_v52  ;;  %v1085_v61 = vor.u32 %v1184_v54, %v1082_v55  ;;  %v1144_v4 = vld [vmem:[#allocation8 + $0xac] sm:$0xf] }
  0x32   :  { %589 = vmatpush.bf16.msrb.mxu0 %v1013_v13  ;;  %552 = vmatpush.bf16.msra.mxu1 %v849_v22  ;;  %v1049_v62 = vor.u32 %v1178_v58, %v1048_v57  ;;  %v920_v63 = vld [vmem:[#allocation8 + $0xa8] sm:$0xf]  ;;  %v1146_v0 = vld [vmem:[#allocation8 + $0xb4] sm:$0xf0]  ;;  %v922_v5 = vld [vmem:[#allocation8 + $0xb8] sm:$0xf0] }
  0x33   :  { %578 = vmatpush.bf16.msra.mxu3 %v853_v26  ;;  %v1032_v1 = vld [vmem:[#allocation8 + $0x188] sm:$0xf]  ;;  %v921_v2 = vor.u32 %v1146_v0, %v920_v63  ;;  %v1174_v3 = vld [vmem:[#allocation8 + $0x194] sm:$0xf0]  ;;  %v925_v7 = vor.u32 %v1144_v4, %v922_v5  ;;  %v1180_v8 = vld [vmem:[#allocation8 + $0x1cc] sm:$0xf] }
  0x34   :  { %v1033_v6 = vor.u32 %v1174_v3, %v1032_v1  ;;  %v1066_v9 = vld [vmem:[#allocation8 + $0x1d8] sm:$0xf0]  ;;  %v904_v11 = vld [vmem:[#allocation8 + $0x88] sm:$0xf]  ;;  %v1142_v12 = vld [vmem:[#allocation8 + $0x94] sm:$0xf0] }
  0x35   :  { %566 = vmatpush.bf16.msra.mxu2 %v961_v34  ;;  %v1069_v10 = vor.u32 %v1180_v8, %v1066_v9  ;;  %v1016_v13 = vld [vmem:[#allocation8 + $0x168] sm:$0xf]  ;;  %v905_v14 = vor.u32 %v1142_v12, %v904_v11  ;;  %v1170_v15 = vld [vmem:[#allocation8 + $0x174] sm:$0xf0]  ;;  %v1140_v16 = vld [vmem:[#allocation8 + $0x8c] sm:$0xf] }
  0x36   :  { %590 = vmatpush.bf16.msrb.mxu0 %v997_v30  ;;  %553 = vmatpush.bf16.msra.mxu1 %v833_v38  ;;  %v906_v17 = vld [vmem:[#allocation8 + $0x98] sm:$0xf0]  ;;  %v1017_v18 = vor.u32 %v1170_v15, %v1016_v13  ;;  %v1176_v20 = vld [vmem:[#allocation8 + $0x1ac] sm:$0xf]  ;;  %v888_v23 = vld [vmem:[#allocation8 + $0x68] sm:$0xf] }
  0x37   :  { %579 = vmatpush.bf16.msra.mxu3 %v837_v40  ;;  %v909_v19 = vor.u32 %v1140_v16, %v906_v17  ;;  %v1050_v21 = vld [vmem:[#allocation8 + $0x1b8] sm:$0xf0]  ;;  %v1138_v24 = vld [vmem:[#allocation8 + $0x74] sm:$0xf0]  ;;  %v1000_v25 = vld [vmem:[#allocation8 + $0x148] sm:$0xf] }
  0x38   :  { %567 = vmatmul.bf16.vlgmr.msra.gmra.mxu2 %v1450_v49  ;;  %v1053_v22 = vor.u32 %v1176_v20, %v1050_v21  ;;  %v889_v26 = vor.u32 %v1138_v24, %v888_v23  ;;  %v1166_v27 = vld [vmem:[#allocation8 + $0x154] sm:$0xf0]  ;;  %v1136_v28 = vld [vmem:[#allocation8 + $0x6c] sm:$0xf]  ;;  %v890_v29 = vld [vmem:[#allocation8 + $0x78] sm:$0xf0] }
  0x39   :  { %611 = vmatpush.bf16.msrb.mxu2 %v1081_v37  ;;  %v1001_v30 = vor.u32 %v1166_v27, %v1000_v25  ;;  %v893_v31 = vor.u32 %v1136_v28, %v890_v29  ;;  %v1172_v32 = vld [vmem:[#allocation8 + $0x18c] sm:$0xf]  ;;  %v1034_v33 = vld [vmem:[#allocation8 + $0x198] sm:$0xf0]  ;;  %v872_v35 = vld [vmem:[#allocation8 + $0x48] sm:$0xf] }
  0x3a   :  { %598 = vmatpush.bf16.msrb.mxu1 %v953_v41  ;;  %591 = vmatpush.bf16.msrb.mxu0 %v981_v45  ;;  %v1037_v34 = vor.u32 %v1172_v32, %v1034_v33  ;;  %v1134_v36 = vld [vmem:[#allocation8 + $0x54] sm:$0xf0]  ;;  %v984_v37 = vld [vmem:[#allocation8 + $0x128] sm:$0xf]  ;;  %v1132_v41 = vld [vmem:[#allocation8 + $0x4c] sm:$0xf] }
  0x3b   :  { %624 = vmatpush.bf16.msrb.mxu3 %v957_v44  ;;  %v873_v38 = vor.u32 %v1134_v36, %v872_v35  ;;  %v1162_v40 = vld [vmem:[#allocation8 + $0x134] sm:$0xf0]  ;;  %v874_v42 = vld [vmem:[#allocation8 + $0x58] sm:$0xf0]  ;;  %v1168_v45 = vld [vmem:[#allocation8 + $0x16c] sm:$0xf] }
  0x3c   :  { %v985_v43 = vor.u32 %v1162_v40, %v984_v37  ;;  %v877_v44 = vor.u32 %v1132_v41, %v874_v42  ;;  %v1018_v46 = vld [vmem:[#allocation8 + $0x178] sm:$0xf0]  ;;  %v856_v47 = vld [vmem:[#allocation8 + $0x28] sm:$0xf]  ;;  %v1130_v50 = vld [vmem:[#allocation8 + $0x34] sm:$0xf0] }
  0x3d   :  { %612 = vmatpush.bf16.msrb.mxu2 %v1065_v53  ;;  %v1021_v48 = vor.u32 %v1168_v45, %v1018_v46  ;;  %v968_v51 = vld [vmem:[#allocation8 + $0x108] sm:$0xf]  ;;  %v1158_v52 = vld [vmem:[#allocation8 + $0x114] sm:$0xf0]  ;;  %v857_v53 = vor.u32 %v1130_v50, %v856_v47  ;;  %v1128_v54 = vld [vmem:[#allocation8 + $0x2c] sm:$0xf] }
  0x3e   :  { %599 = vmatpush.bf16.msrb.mxu1 %v937_v56  ;;  %592 = vmatpush.bf16.msrb.mxu0 %v965_v60  ;;  %v858_v55 = vld [vmem:[#allocation8 + $0x38] sm:$0xf0]  ;;  %v1164_v56 = vld [vmem:[#allocation8 + $0x14c] sm:$0xf]  ;;  %v969_v57 = vor.u32 %v1158_v52, %v968_v51  ;;  %v840_v60 = vld [vmem:[#allocation8 + $0x8] sm:$0xf] }
  0x3f   :  { %625 = vmatpush.bf16.msrb.mxu3 %v941_v59  ;;  %v861_v58 = vor.u32 %v1128_v54, %v858_v55  ;;  %v1002_v59 = vld [vmem:[#allocation8 + $0x158] sm:$0xf0]  ;;  %v1124_v63 = vld [vmem:[#allocation8 + $0xc] sm:$0xf]  ;;  %v1205_v9 = vld [vmem:[%s1478_s3] ss:$0 sm:$0xff] }
  0x40   :  { %v842_v0 = vld [vmem:[#allocation8 + $0x18] sm:$0xf0]  ;;  %v1160_v1 = vld [vmem:[#allocation8 + $0x12c] sm:$0xf]  ;;  %v1193_v21 = vld [vmem:[#allocation9 + $0x30] sm:$0xff] }
  0x41   :  { %613 = vmatpush.bf16.msrb.mxu2 %v1049_v62  ;;  %593 = vmatmul.bf16.vlgmr.msrb.gmra.mxu0 %v1450_v49  ;;  %v1005_v62 = vor.u32 %v1164_v56, %v1002_v59  ;;  %v845_v4 = vor.u32 %v1124_v63, %v842_v0  ;;  %v216_v23 = vld [vmem:[%s1480_s5] sm:$0xf]  ;;  %v1188_v37 = vld [vmem:[#allocation9 + $0x8] sm:$0xff]  ;;  %s1379_s5 = smov [#allocation12]  }
  0x42   :  { %637 = vmatpush.bf16.msra.mxu0 %v1085_v61  ;;  %600 = vmatpush.bf16.msrb.mxu1 %v921_v2  ;;  %v1126_v61 = vld [vmem:[#allocation8 + $0x14] sm:$0xf0]  ;;  %v986_v2 = vld [vmem:[#allocation8 + $0x138] sm:$0xf0]  ;;  %v218_v25 = vperm.slane %v216_v23, 0  ;;  %v219_v32 = vperm.slane %v216_v23, 1 }
  0x43   :  { %626 = vmatpush.bf16.msrb.mxu3 %v925_v7  ;;  %v841_v3 = vor.u32 %v1126_v61, %v840_v60  ;;  %v989_v5 = vor.u32 %v1160_v1, %v986_v2  ;;  %v970_v7 = vld [vmem:[#allocation8 + $0x118] sm:$0xf0]  ;;  %v1187_v42 = vld [vmem:[#allocation9] sm:$0xff]  ;;  %v221_v52 = vperm.slane %v216_v23, 3  ;;  %v220_v54 = vperm.slane %v216_v23, 2  ;;  %s798_s12 = sshll.u32 %s1379_s5, 4  ;;  %s799_s12 = int_to_ptr.vmem [resolvable:$true] %s798_s12 }
  0x45   :  { %614 = vmatpush.bf16.msrb.mxu2 %v1033_v6  ;;  %v1156_v6 = vld [vmem:[#allocation8 + $0x10c] sm:$0xf] }
  0x46   :  { %638 = vmatpush.bf16.msra.mxu0 %v1069_v10  ;;  %601 = vmatpush.bf16.msrb.mxu1 %v905_v14  ;;  %v973_v8 = vor.u32 %v1156_v6, %v970_v7 }
  0x47   :  { %627 = vmatpush.bf16.msrb.mxu3 %v909_v19  ;;  %v1194_v19 = vld [vmem:[#allocation9 + $0x38] sm:$0xff] }
  0x49   :  { %615 = vmatpush.bf16.msrb.mxu2 %v1017_v18 }
  0x4a   :  { %639 = vmatpush.bf16.msra.mxu0 %v1053_v22  ;;  %602 = vmatpush.bf16.msrb.mxu1 %v889_v26  ;;  %v1191_v26 = vld [vmem:[#allocation9 + $0x20] sm:$0xff] }
  0x4b   :  { %628 = vmatpush.bf16.msrb.mxu3 %v893_v31 }
  0x4d   :  { %616 = vmatpush.bf16.msrb.mxu2 %v1001_v30  ;;  %v1190_v30 = vld [vmem:[#allocation9 + $0x18] sm:$0xff] }
  0x4e   :  { %640 = vmatpush.bf16.msra.mxu0 %v1037_v34  ;;  %603 = vmatpush.bf16.msrb.mxu1 %v873_v38  ;;  %v1189_v34 = vld [vmem:[#allocation9 + $0x10] sm:$0xff] }
  0x4f   :  { %629 = vmatpush.bf16.msrb.mxu3 %v877_v44 }
  0x51   :  { %617 = vmatpush.bf16.msrb.mxu2 %v985_v43 }
  0x52   :  { %641 = vmatpush.bf16.msra.mxu0 %v1021_v48  ;;  %604 = vmatpush.bf16.msrb.mxu1 %v857_v53 }
  0x53   :  { %630 = vmatpush.bf16.msrb.mxu3 %v861_v58 }
  0x55   :  { %618 = vmatpush.bf16.msrb.mxu2 %v969_v57 }
  0x56   :  { %642 = vmatpush.bf16.msra.mxu0 %v1005_v62  ;;  %605 = vmatpush.bf16.msrb.mxu1 %v841_v3 }
  0x57   :  { %631 = vmatpush.bf16.msrb.mxu3 %v845_v4 }
  0x58   :  { %619 = vmatmul.bf16.vlgmr.msrb.gmra.mxu2 %v1450_v49 }
  0x5a   :  { %643 = vmatpush.bf16.msra.mxu0 %v989_v5 }
  0x5e   :  { %644 = vmatpush.bf16.msra.mxu0 %v973_v8 }
  0x61   :  { %645 = vmatmul.bf16.vlgmr.msra.gmra.mxu0 %v1450_v49  ;;  %v1192_v49 = vld [vmem:[#allocation9 + $0x28] sm:$0xff] }
  0x9e   :  { %v145_v10 = vpop.f32.mrf.mxu0 }
  0x9f   :  { %v146_v11 = vadd.f32 %v1205_v9, %v145_v10 }
  0xa1   :  { %v149_v12 = vmax.f32 %v146_v11, 0.0 }
  0xa3   :  { %v150_v13 = vpack.c.bf16 %v149_v12, %v149_v12 }
  0xa5   :  { %554 = vmatmul.bf16.vlgmr.msra.gmra.mxu1 %v150_v13  ;;  %580 = vmatmul.bf16.vlgmr.msra.gmra.mxu3 %v150_v13 }
  0xa6   :  { %v147_v14 = vpop.f32.mrf.mxu0  ;;  %764 = vmatpush.bf16.msra.mxu1 %v1194_v19 }
  0xaa   :  { %765 = vmatpush.bf16.msra.mxu1 %v1193_v21 }
  0xae   :  { %766 = vmatpush.bf16.msra.mxu1 %v1192_v49  ;;  %v1206_v49 = vld [vmem:[%s1482_s7] ss:$0 sm:$0xff] }
  0xb2   :  { %767 = vmatpush.bf16.msra.mxu1 %v1191_v26 }
  0xb5   :  { %606 = vmatmul.bf16.vlgmr.msrb.gmra.mxu1 %v150_v13  ;;  %632 = vmatmul.bf16.vlgmr.msrb.gmra.mxu3 %v150_v13 }
  0xb6   :  { %768 = vmatpush.bf16.msra.mxu1 %v1190_v30 }
  0xba   :  { %769 = vmatpush.bf16.msra.mxu1 %v1189_v34 }
  0xbb   :  { %v568_v15 = vpop.f32.mrf.mxu2 }
  0xbe   :  { %v594_v17 = vpop.f32.mrf.mxu0  ;;  %770 = vmatpush.bf16.msra.mxu1 %v1188_v37 }
  0xc2   :  { %771 = vmatpush.bf16.msra.mxu1 %v1187_v42 }
  0xc3   :  { %v570_v16 = vpop.f32.mrf.mxu2 }
  0xc6   :  { %v596_v18 = vpop.f32.mrf.mxu0 }
  0xdb   :  { %v1459_v20 = vpop.f32.mrf.mxu2 }
  0xde   :  { %v646_v22 = vpop.f32.mrf.mxu0 }
  0xe3   :  { %v622_v24 = vpop.f32.mrf.mxu2 }
  0xe6   :  { %v648_v27 = vpop.f32.mrf.mxu0 }
 0x122   :  { %v555_v28 = vpop.f32.mrf.mxu1 }
 0x123   :  { %v556_v29 = vadd.f32 %v555_v28, %v218_v25 }
 0x125   :  { %v569_v31 = vadd.f32 %v568_v15, %v556_v29 }
 0x127   :  { %v1086_v33 = vmul.f32 -1.442695, %v569_v31 }
 0x128   :  { %v581_v35 = vpop.f32.mrf.mxu3 }
 0x129   :  { %1207 = vpow2.f32 %v1086_v33  ;;  %v582_v36 = vadd.f32 %v581_v35, %v219_v32 }
 0x12a   :  { %v557_v38 = vpop.f32.mrf.mxu1 }
 0x12b   :  { %v595_v40 = vadd.f32 %v594_v17, %v582_v36 }
 0x12d   :  { %v1087_v41 = vmul.f32 -1.442695, %v595_v40 }
 0x12f   :  { %v1208_v43 = vpop.eup %1207  ;;  %1209 = vpow2.f32 %v1087_v41 }
 0x130   :  { %v653_v44 = vadd.f32 1.0, %v1208_v43  ;;  %v583_v45 = vpop.f32.mrf.mxu3 }
 0x132   :  { %1211 = vrcp.f32 %v653_v44  ;;  %v607_v46 = vpop.f32.mrf.mxu1  ;;  %v665_v57 = vand.u32 2147483648, %v653_v44  ;;  %v663_v60 = vand.u32 2147483647, %v653_v44  ;;  %vm659_vm2 = vweird.f32 %v653_v44 }
 0x133   :  { %v608_v62 = vadd.f32 %v607_v46, %v220_v54 }
 0x134   :  { %v666_v1 = vor.u32 1.1754944e-38, %v665_v57  ;;  %vm664_vm4 = vcmp.eq.f32.partialorder %v663_v60, 8.507059e+37 }
 0x135   :  { %v1210_v47 = vpop.eup %1209  ;;  %v621_v6 = vadd.f32 %v1459_v20, %v608_v62 }
 0x136   :  { %v672_v48 = vadd.f32 1.0, %v1210_v47 }
 0x138   :  { %v1212_v50 = vpop.eup %1211  ;;  %1213 = vrcp.f32 %v672_v48  ;;  %v633_v51 = vpop.f32.mrf.mxu3  ;;  %v684_v10 = vand.u32 2147483648, %v672_v48  ;;  %v682_v11 = vand.u32 2147483647, %v672_v48  ;;  %vm678_vm6 = vweird.f32 %v672_v48 }
 0x139   :  { %v655_v53 = vmul.f32 %v1212_v50, %v653_v44  ;;  %v634_v58 = vadd.f32 %v633_v51, %v221_v52  ;;  %vm660_vm1 = vweird.f32 %v1212_v50 }
 0x13a   :  { %v609_v55 = vpop.f32.mrf.mxu1  ;;  %vm661_vm3 = vmor %vm659_vm2, %vm660_vm1  ;;  %v685_v15 = vor.u32 1.1754944e-38, %v684_v10  ;;  %vm683_vm8 = vcmp.eq.f32.partialorder %v682_v11, 8.507059e+37 }
 0x13b   :  { %v656_v56 = vsub.f32 1.0, %v655_v53  ;;  %v647_v4 = vadd.f32 %v646_v22, %v634_v58 }
 0x13d   :  { %v657_v59 = vmul.f32 %v1212_v50, %v656_v56 }
 0x13e   :  { %v1214_v61 = vpop.eup %1213 }
 0x13f   :  { %v674_v63 = vmul.f32 %v1214_v61, %v672_v48  ;;  %v658_v0 = vadd.f32 %v1212_v50, %v657_v59  ;;  %vm679_vm5 = vweird.f32 %v1214_v61 }
 0x140   :  { %v635_v2 = vpop.f32.mrf.mxu3  ;;  %vm680_vm7 = vmor %vm678_vm6, %vm679_vm5 }
 0x141   :  { %v675_v3 = vsub.f32 1.0, %v674_v63  ;;  %v662_v5 = vsel %vm661_vm3, %v1212_v50, %v658_v0 }
 0x142   :  { %v667_v7 = vsel %vm664_vm4, %v666_v1, %v662_v5 }
 0x143   :  { %v676_v8 = vmul.f32 %v1214_v61, %v675_v3  ;;  %v688_v9 = vmul.f32 %v667_v7, %v647_v4 }
 0x145   :  { %v689_v12 = vadd.f32 %v688_v9, %v621_v6  ;;  %v677_v13 = vadd.f32 %v1214_v61, %v676_v8 }
 0x147   :  { %1215 = vtanh.f32 %v689_v12  ;;  %v681_v14 = vsel %vm680_vm7, %v1214_v61, %v677_v13 }
 0x148   :  { %v686_v16 = vsel %vm683_vm8, %v685_v15, %v681_v14 }
 0x149   :  { %v691_v17 = vsub.f32 1.0, %v686_v16  ;;  %v693_v20 = vmul.f32 %v686_v16, %v1446_v39 }
 0x14d   :  { %v1216_v18 = vpop.eup %1215 }
 0x14e   :  { %v692_v19 = vmul.f32 %v1216_v18, %v691_v17 }
 0x150   :  { %v694_v21 = vadd.f32 %v693_v20, %v692_v19 }
 0x152   :  { %v695_v22 = vpack.c.bf16 %v694_v21, %v694_v21  ;;  %781 = vst [vmem:[#allocation12] sm:$0xff] %v694_v21 }
 0x153   :  { %803 = dma.vmem_to_hbm [thread:$0]  %s799_s12, 128, %s801_s15, [#allocation13]  }
 0x154   :  { %772 = vmatmul.bf16.vlgmr.msra.gmra.mxu1 %v695_v22 }
 0x1d1   :  { %v773_v23 = vpop.f32.mrf.mxu1 }
 0x1d2   :  { %v774_v24 = vadd.f32 %v1206_v49, %v773_v23 }
 0x1d4   :  { %v777_v39 = vmax.f32 %v774_v24, -5.0 }
 0x1d6   :  { %v778_v25 = vmin.f32 %v777_v39, 2.0 }
 0x1d8   :  { %779 = vst [vmem:[#allocation11] sm:$0xff] %v778_v25 }
 0x1d9   :  { %v775_v26 = vpop.f32.mrf.mxu1  ;;  %792 = dma.vmem_to_hbm [thread:$0]  %s788_s19, 128, %s790_s22, [#allocation5]  }
 0x1da   :  { %1367 = dma.done.wait [#allocation5], 128  }
 0x1db   :  { %1368 = vsyncadd [#allocation5], 4294967168 }
 0x1dc   :  { %1369 = dma.done.wait [#allocation13], 128  }
 0x1dd   :  { %1370 = vsyncadd [#allocation13], 4294967168 }
 0x1de   :  { %812 = vsyncpa [#allocation4], 1 }
 0x1df   :  { %813 = vsyncpa [#allocation7], 1 }
 0x1e0   :  { %814 = vsyncpa [#allocation10], 1 }
 0x1e1   :  { %815 = vsyncpa [#allocation5], 1 }
 0x1e2   :  { %816 = vsyncpa [#allocation13], 1 }

</bundles_post_ra>
